<compile_context>
chip_gen: v5e
topology: v5e:2x2
jax: 0.10.0
libtpu: 0.0.40
codegen_flags: <defaults>
</compile_context>

<pallas_src>
import jax
import jax.numpy as jnp
from jax.experimental import pallas as pl
from jax.experimental.pallas import tpu as pltpu


def _round_up(x, m):
    return (x + m - 1) // m * m


# ----------------------------------------------------------------------------
# Fused (aug + encoder + head) kernel, tiled over (M, K).
#   acc    += x_tile @ W1_tile          (bf16 in, f32 acc, MXU)
#   rowsum += sum(x_tile, axis=1)       (for the folded per-image mean)
# at k == last:
#   h = relu(B*C*acc + B*(1-C)/D * rowsum * colsum(W1) + b1)
#   g = relu(h @ W2 + b2)
#   z = g @ W3 + b3
# ----------------------------------------------------------------------------
def _make_fused_kernel(d_true, tk, w1_resident):
    brightness = 1.4           # 1 + 0.4 (deterministic ColorJitter factor)
    contrast = 1.4             # 1 + 0.4
    # Plain Python floats (NOT jnp scalars) so nothing is captured as a const.
    bc = float(brightness * contrast)
    bm = float(brightness * (1.0 - contrast) / float(d_true))

    def kernel(x_ref, w1_ref, w1s_ref, b1_ref, w2_ref, b2_ref, w3_ref, b3_ref,
               z_ref, acc_ref, rsum_ref):
        k = pl.program_id(1)

        @pl.when(k == 0)
        def _():
            acc_ref[...] = jnp.zeros_like(acc_ref)
            rsum_ref[...] = jnp.zeros_like(rsum_ref)

        x_bf = x_ref[...]                                     # (tm, tk) bf16
        if w1_resident:
            off = pl.multiple_of(k * tk, tk)
            w1_tile = w1_ref[pl.ds(off, tk), :]               # slice resident W1
        else:
            w1_tile = w1_ref[...]                             # streamed K panel

        # MXU: bf16 inputs, f32 accumulation.
        acc_ref[...] += jnp.dot(x_bf, w1_tile,
                                preferred_element_type=jnp.float32)
        # Lane-axis reduce on data already in VMEM (XLU slot, overlaps MXU).
        rsum_ref[...] += jnp.sum(x_bf.astype(jnp.float32), axis=1, keepdims=True)

        @pl.when(k == pl.num_programs(1) - 1)
        def _():
            # Folded deterministic brightness/contrast jitter + encoder bias/ReLU.
            h = (bc * acc_ref[...]
                 + bm * rsum_ref[...] * w1s_ref[...]
                 + b1_ref[...])
            h = jnp.maximum(h, 0.0)
            # Projection head (hidden and proj padded to lane multiples).
            g = jnp.dot(h.astype(jnp.bfloat16), w2_ref[...],
                        preferred_element_type=jnp.float32) + b2_ref[...]
            g = jnp.maximum(g, 0.0)
            z = jnp.dot(g.astype(jnp.bfloat16), w3_ref[...],
                        preferred_element_type=jnp.float32) + b3_ref[...]
            z_ref[...] = z.astype(z_ref.dtype)

    return kernel


def simclr_forward(x, params):
    """x: (N, C, H, W) float32. Returns projection z: (N, proj) float32."""
    w1, b1, w2, b2, w3, b3 = params
    N, C, H, W = x.shape
    D = C * H * W
    hidden = w1.shape[1]
    proj = w3.shape[1]

    hidden_pad = _round_up(hidden, 128)
    proj_pad = _round_up(proj, 128)

    # ---- M tiling (sublane multiples; split so v7x's 2nd TC gets work) ------
    m_pad = _round_up(max(N, 8), 8)
    tm = min(m_pad, 256)
    m_pad = _round_up(m_pad, tm)
    if m_pad // tm == 1 and tm >= 16:
        tm = _round_up(tm // 2, 8)
        m_pad = _round_up(m_pad, tm)

    # ---- VMEM budget from the actual chip (v5e/v6e 128 MiB, v7x 64 MiB) -----
    try:
        vmem_cap = int(pltpu.get_tpu_info().vmem_capacity_bytes)
    except Exception:
        vmem_cap = 64 * 1024 * 1024          # conservative (v7x-sized) fallback
    budget = int(vmem_cap * 0.7)

    def vmem_use(tk_, resident_):
        d_p = _round_up(D, tk_)
        use = 2 * tm * tk_ * 2                                   # x bf16 (dbl buf)
        if resident_:
            use += 2 * d_p * hidden_pad * 2                      # W1 resident bf16
        else:
            use += 2 * tk_ * hidden_pad * 2                      # W1 K panel bf16
        use += 2 * (hidden_pad * hidden_pad + hidden_pad * proj_pad) * 2  # W2, W3
        use += 2 * (3 * hidden_pad + proj_pad) * 4               # b1,b2,w1sum,b3
        use += 2 * tm * proj_pad * 4                             # output block
        use += tm * hidden_pad * 4 + tm * 128 * 4                # f32 scratch
        return use

    tk_candidates = [t for t in (2048, 1024, 512, 256, 128)
                     if t <= max(128, _round_up(D, 128))]
    w1_resident = False
    tk = None
    for cand in tk_candidates:                     # prefer a fully resident W1
        if vmem_use(cand, True) <= budget:
            w1_resident, tk = True, cand
            break
    if tk is None:                                 # fall back to streamed W1
        for cand in tk_candidates:
            if vmem_use(cand, False) <= budget:
                tk = cand
                break
        if tk is None:
            tk = 128
    d_pad = _round_up(D, tk)

    # ---- zero-padded operands (padding is exact: contributes 0 everywhere) --
    # Flatten exactly like torch .view(-1, C*H*W) (row-major NCHW); stream bf16.
    x_flat = x.reshape(N, D)
    if m_pad == N and d_pad == D:
        x_p = x_flat.astype(jnp.bfloat16)
    else:
        x_p = (jnp.zeros((m_pad, d_pad), jnp.bfloat16)
               .at[:N, :D].set(x_flat.astype(jnp.bfloat16)))

    w1_p = (jnp.zeros((d_pad, hidden_pad), jnp.bfloat16)
            .at[:D, :hidden].set(w1.astype(jnp.bfloat16)))
    # colsum(W1) precomputed once, in f32 from the f32 weights (accuracy).
    w1sum_p = (jnp.zeros((1, hidden_pad), jnp.float32)
               .at[:, :hidden].set(jnp.sum(w1.astype(jnp.float32), axis=0,
                                           keepdims=True)))
    b1_p = jnp.zeros((1, hidden_pad), jnp.float32).at[:, :hidden].set(
        b1.reshape(1, hidden))
    w2_p = (jnp.zeros((hidden_pad, hidden_pad), jnp.bfloat16)
            .at[:hidden, :hidden].set(w2.astype(jnp.bfloat16)))
    b2_p = jnp.zeros((1, hidden_pad), jnp.float32).at[:, :hidden].set(
        b2.reshape(1, hidden))
    w3_p = (jnp.zeros((hidden_pad, proj_pad), jnp.bfloat16)
            .at[:hidden, :proj].set(w3.astype(jnp.bfloat16)))
    b3_p = jnp.zeros((1, proj_pad), jnp.float32).at[:, :proj].set(
        b3.reshape(1, proj))

    grid = (m_pad // tm, d_pad // tk)
    kernel = _make_fused_kernel(D, tk, w1_resident)

    if w1_resident:
        w1_spec = pl.BlockSpec((d_pad, hidden_pad), lambda m, k: (0, 0))
    else:
        w1_spec = pl.BlockSpec((tk, hidden_pad), lambda m, k: (k, 0))

    z_pad = pl.pallas_call(
        kernel,
        out_shape=jax.ShapeDtypeStruct((m_pad, proj_pad), jnp.float32),
        grid=grid,
        in_specs=[
            pl.BlockSpec((tm, tk), lambda m, k: (m, k)),              # x (bf16)
            w1_spec,                                                  # W1
            pl.BlockSpec((1, hidden_pad), lambda m, k: (0, 0)),       # colsum(W1)
            pl.BlockSpec((1, hidden_pad), lambda m, k: (0, 0)),       # b1
            pl.BlockSpec((hidden_pad, hidden_pad), lambda m, k: (0, 0)),  # W2
            pl.BlockSpec((1, hidden_pad), lambda m, k: (0, 0)),       # b2
            pl.BlockSpec((hidden_pad, proj_pad), lambda m, k: (0, 0)),    # W3
            pl.BlockSpec((1, proj_pad), lambda m, k: (0, 0)),         # b3
        ],
        out_specs=pl.BlockSpec((tm, proj_pad), lambda m, k: (m, 0)),
        scratch_shapes=[
            pltpu.VMEM((tm, hidden_pad), jnp.float32),   # x@W1 accumulator
            pltpu.VMEM((tm, 1), jnp.float32),            # rowsum(x)
        ],
        compiler_params=pltpu.CompilerParams(
            dimension_semantics=("parallel", "arbitrary"),
            vmem_limit_bytes=int(vmem_cap * 0.85),
        ),
    )(x_p, w1_p, w1sum_p, b1_p, w2_p, b2_p, w3_p, b3_p)

    return z_pad[:N, :proj]


def _reference_forward(x, params):
    """Pure-JAX f32 reference of the same (deterministic-aug) forward."""
    w1, b1, w2, b2, w3, b3 = params
    N, C, H, W = x.shape
    D = C * H * W
    v = x.reshape(N, D) * 1.4
    m = jnp.mean(v, axis=1, keepdims=True)
    view = (v - m) * 1.4 + m
    h = jnp.maximum(view @ w1 + b1, 0.0)
    g = jnp.maximum(h @ w2 + b2, 0.0)
    return g @ w3 + b3


def init_params(key, d_in, hidden, proj):
    k1, k2, k3 = jax.random.split(key, 3)
    w1 = jax.random.normal(k1, (d_in, hidden), jnp.float32) * (1.0 / jnp.sqrt(d_in))
    b1 = jnp.zeros((1, hidden), jnp.float32)
    w2 = jax.random.normal(k2, (hidden, hidden), jnp.float32) * (1.0 / jnp.sqrt(hidden))
    b2 = jnp.zeros((1, hidden), jnp.float32)
    w3 = jax.random.normal(k3, (hidden, proj), jnp.float32) * (1.0 / jnp.sqrt(hidden))
    b3 = jnp.zeros((1, proj), jnp.float32)
    return (w1, b1, w2, b2, w3, b3)


if __name__ == "__main__":
    # Small shapes consistent with the module: batch=2, channels=4, 16x16 images.
    N, C, H, W = 2, 4, 16, 16
    D = C * H * W          # 1024
    HIDDEN = 128
    PROJ = 64

    key = jax.random.PRNGKey(0)
    kx, kp = jax.random.split(key)
    x = jax.random.normal(kx, (N, C, H, W), jnp.float32)
    params = init_params(kp, D, HIDDEN, PROJ)

    z = simclr_forward(x, params)
    z = jax.block_until_ready(z)
    assert z.shape == (N, PROJ) and z.dtype == jnp.float32

    # Loose tolerance: kernel streams x / weights as bf16 with f32 accumulation.
    z_ref = _reference_forward(x, params)
    assert jnp.allclose(z, z_ref, rtol=1e-1, atol=1e-1)

    print("KERNEL_OK")
</pallas_src>

<mosaic_0001>
module attributes {stable_mosaic.version = 11 : i64} {
  func.func @kernel(%arg0: i32, %arg1: i32, %arg2: memref<8x1024xbf16, #tpu.memory_space<vmem>>, %arg3: memref<1024x128xbf16, #tpu.memory_space<vmem>>, %arg4: memref<1x128xf32, #tpu.memory_space<vmem>>, %arg5: memref<1x128xf32, #tpu.memory_space<vmem>>, %arg6: memref<128x128xbf16, #tpu.memory_space<vmem>>, %arg7: memref<1x128xf32, #tpu.memory_space<vmem>>, %arg8: memref<128x128xbf16, #tpu.memory_space<vmem>>, %arg9: memref<1x128xf32, #tpu.memory_space<vmem>>, %arg10: memref<8x128xf32, #tpu.memory_space<vmem>>, %arg11: memref<8x128xf32, #tpu.memory_space<vmem>>, %arg12: memref<8x1xf32, #tpu.memory_space<vmem>>) attributes {dimension_semantics = [#tpu.dimension_semantics<parallel>, #tpu.dimension_semantics<arbitrary>], iteration_bounds = array<i64: 1, 1>, scalar_prefetch = 0 : i64, scratch_operands = 2 : i64, tpu.core_type = #tpu.core_type<tc>, window_params = [{transform_indices = @transform_0, window_bounds = array<i64: 8, 1024>}, {pipeline_mode = #tpu.pipeline_mode<synchronous>, transform_indices = @transform_1, window_bounds = array<i64: 1024, 128>}, {pipeline_mode = #tpu.pipeline_mode<synchronous>, transform_indices = @transform_2, window_bounds = array<i64: 1, 128>}, {pipeline_mode = #tpu.pipeline_mode<synchronous>, transform_indices = @transform_3, window_bounds = array<i64: 1, 128>}, {pipeline_mode = #tpu.pipeline_mode<synchronous>, transform_indices = @transform_4, window_bounds = array<i64: 128, 128>}, {pipeline_mode = #tpu.pipeline_mode<synchronous>, transform_indices = @transform_5, window_bounds = array<i64: 1, 128>}, {pipeline_mode = #tpu.pipeline_mode<synchronous>, transform_indices = @transform_6, window_bounds = array<i64: 128, 128>}, {pipeline_mode = #tpu.pipeline_mode<synchronous>, transform_indices = @transform_7, window_bounds = array<i64: 1, 128>}, {transform_indices = @transform_8, window_bounds = array<i64: 8, 128>}]} {
    %c0_i32 = arith.constant 0 : i32
    %0 = arith.cmpi eq, %arg1, %c0_i32 : i32
    %1 = arith.extui %0 : i1 to i32
    %c0_i32_0 = arith.constant 0 : i32
    %2 = arith.cmpi ne, %1, %c0_i32_0 : i32
    scf.if %2 {
      %cst_14 = arith.constant 0.000000e+00 : f32
      %21 = vector.broadcast %cst_14 : f32 to vector<8x128xf32>
      %c0_15 = arith.constant 0 : index
      %c0_16 = arith.constant 0 : index
      %22 = vector.load %arg11[%c0_15, %c0_16] : memref<8x128xf32, #tpu.memory_space<vmem>>, vector<8x128xf32>
      tpu.vector_store %arg11[%c0_15, %c0_16], %21 {strides = array<i32>} : memref<8x128xf32, #tpu.memory_space<vmem>>, vector<8x128xf32>,
      %cst_17 = arith.constant 0.000000e+00 : f32
      %23 = vector.broadcast %cst_17 : f32 to vector<8x1xf32>
      %c0_18 = arith.constant 0 : index
      %c0_19 = arith.constant 0 : index
      %24 = vector.load %arg12[%c0_18, %c0_19] : memref<8x1xf32, #tpu.memory_space<vmem>>, vector<8x1xf32>
      tpu.vector_store %arg12[%c0_18, %c0_19], %23 {strides = array<i32>} : memref<8x1xf32, #tpu.memory_space<vmem>>, vector<8x1xf32>,
    } else {
    }
    %c0 = arith.constant 0 : index
    %c0_1 = arith.constant 0 : index
    %3 = vector.load %arg2[%c0, %c0_1] : memref<8x1024xbf16, #tpu.memory_space<vmem>>, vector<8x1024xbf16>
    %c1024_i32 = arith.constant 1024 : i32
    %4 = arith.muli %arg1, %c1024_i32 : i32
    %5 = tpu.assume_multiple %4, 1024 : i32
    %6 = arith.index_cast %5 : i32 to index
    %c0_2 = arith.constant 0 : index
    %7 = vector.load %arg3[%6, %c0_2] : memref<1024x128xbf16, #tpu.memory_space<vmem>>, vector<1024x128xbf16>
    %c0_3 = arith.constant 0 : index
    %c0_4 = arith.constant 0 : index
    %8 = vector.load %arg11[%c0_3, %c0_4] : memref<8x128xf32, #tpu.memory_space<vmem>>, vector<8x128xf32>
    %cst = arith.constant dense<0.000000e+00> : vector<8x128xf32>
    %9 = tpu.matmul %3, %7, %cst {dimension_numbers = #tpu.dot_dimension_numbers<[1], [0], [0], [1], [0, 0, 1, 1], [], []>} : vector<8x1024xbf16>, vector<1024x128xbf16>, vector<8x128xf32> -> vector<8x128xf32>
    %10 = arith.addf %8, %9 : vector<8x128xf32>
    %c0_5 = arith.constant 0 : index
    %c0_6 = arith.constant 0 : index
    %11 = vector.load %arg11[%c0_5, %c0_6] : memref<8x128xf32, #tpu.memory_space<vmem>>, vector<8x128xf32>
    tpu.vector_store %arg11[%c0_5, %c0_6], %10 {strides = array<i32>} : memref<8x128xf32, #tpu.memory_space<vmem>>, vector<8x128xf32>,
    %c0_7 = arith.constant 0 : index
    %c0_8 = arith.constant 0 : index
    %12 = vector.load %arg12[%c0_7, %c0_8] : memref<8x1xf32, #tpu.memory_space<vmem>>, vector<8x1xf32>
    %13 = arith.extf %3 : vector<8x1024xbf16> to vector<8x1024xf32>
    %cst_9 = arith.constant dense<0.000000e+00> : vector<8xf32>
    %14 = vector.multi_reduction <add>, %13, %cst_9 [1] : vector<8x1024xf32> to vector<8xf32>
    %15 = vector.shape_cast %14 : vector<8xf32> to vector<8x1xf32>
    %16 = arith.addf %12, %15 : vector<8x1xf32>
    %c0_10 = arith.constant 0 : index
    %c0_11 = arith.constant 0 : index
    %17 = vector.load %arg12[%c0_10, %c0_11] : memref<8x1xf32, #tpu.memory_space<vmem>>, vector<8x1xf32>
    tpu.vector_store %arg12[%c0_10, %c0_11], %16 {strides = array<i32>} : memref<8x1xf32, #tpu.memory_space<vmem>>, vector<8x1xf32>,
    %c0_i32_12 = arith.constant 0 : i32
    %18 = arith.cmpi eq, %arg1, %c0_i32_12 : i32
    %19 = arith.extui %18 : i1 to i32
    %c0_i32_13 = arith.constant 0 : i32
    %20 = arith.cmpi ne, %19, %c0_i32_13 : i32
    scf.if %20 {
      %c0_14 = arith.constant 0 : index
      %c0_15 = arith.constant 0 : index
      %21 = vector.load %arg11[%c0_14, %c0_15] : memref<8x128xf32, #tpu.memory_space<vmem>>, vector<8x128xf32>
      %cst_16 = arith.constant 1.960000e+00 : f32
      %22 = vector.broadcast %cst_16 : f32 to vector<8x128xf32>
      %23 = arith.mulf %22, %21 : vector<8x128xf32>
      %c0_17 = arith.constant 0 : index
      %c0_18 = arith.constant 0 : index
      %24 = vector.load %arg12[%c0_17, %c0_18] : memref<8x1xf32, #tpu.memory_space<vmem>>, vector<8x1xf32>
      %cst_19 = arith.constant -5.468750e-04 : f32
      %25 = vector.broadcast %cst_19 : f32 to vector<8x1xf32>
      %26 = arith.mulf %25, %24 : vector<8x1xf32>
      %c0_20 = arith.constant 0 : index
      %c0_21 = arith.constant 0 : index
      %27 = vector.load %arg4[%c0_20, %c0_21] : memref<1x128xf32, #tpu.memory_space<vmem>>, vector<1x128xf32>
      %28 = vector.broadcast %26 : vector<8x1xf32> to vector<8x128xf32>
      %29 = vector.broadcast %27 : vector<1x128xf32> to vector<8x128xf32>
      %30 = arith.mulf %28, %29 : vector<8x128xf32>
      %31 = arith.addf %23, %30 : vector<8x128xf32>
      %c0_22 = arith.constant 0 : index
      %c0_23 = arith.constant 0 : index
      %32 = vector.load %arg5[%c0_22, %c0_23] : memref<1x128xf32, #tpu.memory_space<vmem>>, vector<1x128xf32>
      %33 = vector.broadcast %32 : vector<1x128xf32> to vector<8x128xf32>
      %34 = arith.addf %31, %33 : vector<8x128xf32>
      %cst_24 = arith.constant 0.000000e+00 : f32
      %35 = vector.broadcast %cst_24 : f32 to vector<8x128xf32>
      %36 = arith.maximumf %34, %35 : vector<8x128xf32>
      %37 = arith.truncf %36 : vector<8x128xf32> to vector<8x128xbf16>
      %c0_25 = arith.constant 0 : index
      %c0_26 = arith.constant 0 : index
      %38 = vector.load %arg6[%c0_25, %c0_26] : memref<128x128xbf16, #tpu.memory_space<vmem>>, vector<128x128xbf16>
      %cst_27 = arith.constant dense<0.000000e+00> : vector<8x128xf32>
      %39 = tpu.matmul %37, %38, %cst_27 {dimension_numbers = #tpu.dot_dimension_numbers<[1], [0], [0], [1], [0, 0, 1, 1], [], []>} : vector<8x128xbf16>, vector<128x128xbf16>, vector<8x128xf32> -> vector<8x128xf32>
      %c0_28 = arith.constant 0 : index
      %c0_29 = arith.constant 0 : index
      %40 = vector.load %arg7[%c0_28, %c0_29] : memref<1x128xf32, #tpu.memory_space<vmem>>, vector<1x128xf32>
      %41 = vector.broadcast %40 : vector<1x128xf32> to vector<8x128xf32>
      %42 = arith.addf %39, %41 : vector<8x128xf32>
      %cst_30 = arith.constant 0.000000e+00 : f32
      %43 = vector.broadcast %cst_30 : f32 to vector<8x128xf32>
      %44 = arith.maximumf %42, %43 : vector<8x128xf32>
      %45 = arith.truncf %44 : vector<8x128xf32> to vector<8x128xbf16>
      %c0_31 = arith.constant 0 : index
      %c0_32 = arith.constant 0 : index
      %46 = vector.load %arg8[%c0_31, %c0_32] : memref<128x128xbf16, #tpu.memory_space<vmem>>, vector<128x128xbf16>
      %cst_33 = arith.constant dense<0.000000e+00> : vector<8x128xf32>
      %47 = tpu.matmul %45, %46, %cst_33 {dimension_numbers = #tpu.dot_dimension_numbers<[1], [0], [0], [1], [0, 0, 1, 1], [], []>} : vector<8x128xbf16>, vector<128x128xbf16>, vector<8x128xf32> -> vector<8x128xf32>
      %c0_34 = arith.constant 0 : index
      %c0_35 = arith.constant 0 : index
      %48 = vector.load %arg9[%c0_34, %c0_35] : memref<1x128xf32, #tpu.memory_space<vmem>>, vector<1x128xf32>
      %49 = vector.broadcast %48 : vector<1x128xf32> to vector<8x128xf32>
      %50 = arith.addf %47, %49 : vector<8x128xf32>
      %c0_36 = arith.constant 0 : index
      %c0_37 = arith.constant 0 : index
      %51 = vector.load %arg10[%c0_36, %c0_37] : memref<8x128xf32, #tpu.memory_space<vmem>>, vector<8x128xf32>
      tpu.vector_store %arg10[%c0_36, %c0_37], %50 {strides = array<i32>} : memref<8x128xf32, #tpu.memory_space<vmem>>, vector<8x128xf32>,
    } else {
    }
    return
  }
  func.func @transform_0(%arg0: i32, %arg1: i32) -> (i32, i32) {
    %c0_i32 = arith.constant 0 : i32
    return %arg0, %arg1 : i32, i32
  }
  func.func @transform_1(%arg0: i32, %arg1: i32) -> (i32, i32) {
    %c0_i32 = arith.constant 0 : i32
    %c0_i32_0 = arith.constant 0 : i32
    %c0_i32_1 = arith.constant 0 : i32
    return %c0_i32, %c0_i32_0 : i32, i32
  }
  func.func @transform_2(%arg0: i32, %arg1: i32) -> (i32, i32) {
    %c0_i32 = arith.constant 0 : i32
    %c0_i32_0 = arith.constant 0 : i32
    %c0_i32_1 = arith.constant 0 : i32
    return %c0_i32, %c0_i32_0 : i32, i32
  }
  func.func @transform_3(%arg0: i32, %arg1: i32) -> (i32, i32) {
    %c0_i32 = arith.constant 0 : i32
    %c0_i32_0 = arith.constant 0 : i32
    %c0_i32_1 = arith.constant 0 : i32
    return %c0_i32, %c0_i32_0 : i32, i32
  }
  func.func @transform_4(%arg0: i32, %arg1: i32) -> (i32, i32) {
    %c0_i32 = arith.constant 0 : i32
    %c0_i32_0 = arith.constant 0 : i32
    %c0_i32_1 = arith.constant 0 : i32
    return %c0_i32, %c0_i32_0 : i32, i32
  }
  func.func @transform_5(%arg0: i32, %arg1: i32) -> (i32, i32) {
    %c0_i32 = arith.constant 0 : i32
    %c0_i32_0 = arith.constant 0 : i32
    %c0_i32_1 = arith.constant 0 : i32
    return %c0_i32, %c0_i32_0 : i32, i32
  }
  func.func @transform_6(%arg0: i32, %arg1: i32) -> (i32, i32) {
    %c0_i32 = arith.constant 0 : i32
    %c0_i32_0 = arith.constant 0 : i32
    %c0_i32_1 = arith.constant 0 : i32
    return %c0_i32, %c0_i32_0 : i32, i32
  }
  func.func @transform_7(%arg0: i32, %arg1: i32) -> (i32, i32) {
    %c0_i32 = arith.constant 0 : i32
    %c0_i32_0 = arith.constant 0 : i32
    %c0_i32_1 = arith.constant 0 : i32
    return %c0_i32, %c0_i32_0 : i32, i32
  }
  func.func @transform_8(%arg0: i32, %arg1: i32) -> (i32, i32) {
    %c0_i32 = arith.constant 0 : i32
    %c0_i32_0 = arith.constant 0 : i32
    return %arg0, %c0_i32 : i32, i32
  }
}

</mosaic_0001>

<bundles_post_ra>
// kernel: tpu_custom_call.1
= control target key start
LH: loop header
LB: loop body
LE: loop exit
PB: predicated region body
PF: predicated region fallthrough
CT: control target
= control target key end

     0   :  { %13 = vsyncpa [#allocation5], 0  ;;  %s1635_s0 = inlined_call_operand.hbm [shape: bf16[8,1024], index: 0, kind: input, shape index: {}]   ;;  %s1636_s1 = inlined_call_operand.hbm [shape: bf16[1024,128], index: 1, kind: input, shape index: {}]   ;;  %s1637_s2 = inlined_call_operand.vmem [shape: f32[1,128], index: 2, kind: input, shape index: {}]   ;;  %s1638_s3 = inlined_call_operand.vmem [shape: f32[1,128], index: 3, kind: input, shape index: {}]   ;;  %s1639_s4 = inlined_call_operand.hbm [shape: bf16[128,128], index: 4, kind: input, shape index: {}]   ;;  %s1640_s5 = inlined_call_operand.vmem [shape: f32[1,128], index: 5, kind: input, shape index: {}]   ;;  %s1641_s6 = inlined_call_operand.hbm [shape: bf16[128,128], index: 6, kind: input, shape index: {}]   ;;  %s1642_s7 = inlined_call_operand.vmem [shape: f32[1,128], index: 7, kind: input, shape index: {}]   ;;  %s1643_s8 = inlined_call_operand.hbm [shape: f32[8,128], index: 8, kind: output, shape index: {}]  }
   0x1   :  { %14 = vsyncpa [#allocation8], 0 }
   0x2   :  { %15 = vsyncpa [#allocation11], 0  ;;  %s32_s29 = sshll.u32 %s1636_s1, 4  ;;  %s33_s29 = int_to_ptr.hbm [resolvable:$true] %s32_s29 }
   0x3   :  { %16 = vsyncpa [#allocation6], 0  ;;  %s1528_s30 = smov [#allocation7]   ;;  %s22_s12 = sshll.u32 %s1635_s0, 4  ;;  %s23_s12 = int_to_ptr.hbm [resolvable:$true] %s22_s12 }
   0x4   :  { %s34_s9 = sshll.u32 %s1528_s30, 4  ;;  %s1529_s13 = smov 64   ;;  %s35_s9 = int_to_ptr.vmem [resolvable:$true] %s34_s9 }
   0x5   :  { %s1530_s14 = smov 4   ;;  %s1531_s15 = smov [#allocation4]  }
   0x6   :  { %40 = dma.hbm_to_vmem [thread:$0]  %s33_s29, 8192, %s35_s9, [#allocation8], %s1529_s13, %s1529_s13, %s1530_s14  }
   0x7   :  { %s24_s16 = sshll.u32 %s1531_s15, 4  ;;  %s49_s19 = sshll.u32 %s1639_s4, 4  ;;  %s25_s16 = int_to_ptr.vmem [resolvable:$true] %s24_s16  ;;  %s50_s19 = int_to_ptr.hbm [resolvable:$true] %s49_s19 }
   0x8   :  { %27 = dma.hbm_to_vmem [thread:$0]  %s23_s12, 512, %s25_s16, [#allocation5]  }
   0x9   :  { %s64_s21 = sshll.u32 %s1641_s6, 4  ;;  %s1532_s22 = smov [#allocation9]   ;;  %s65_s21 = int_to_ptr.hbm [resolvable:$true] %s64_s21 }
   0xa   :  { %s51_s23 = sshll.u32 %s1532_s22, 4  ;;  %s1533_s0 = smov [#allocation10]   ;;  %s52_s23 = int_to_ptr.vmem [resolvable:$true] %s51_s23 }
   0xb   :  { %57 = dma.hbm_to_vmem [thread:$0]  %s50_s19, 1024, %s52_s23, [#allocation8], %s1529_s13, %s1529_s13, %s1530_s14  }
   0xc   :  { %s66_s24 = sshll.u32 %s1533_s0, 4  ;;  %s67_s24 = int_to_ptr.vmem [resolvable:$true] %s66_s24 }
   0xd   :  { %72 = dma.hbm_to_vmem [thread:$0]  %s65_s21, 1024, %s67_s24, [#allocation11], %s1529_s13, %s1529_s13, %s1530_s14  }
   0xe   :  { %1520 = dma.done.wait [#allocation5], 512  }
   0xf   :  { %1521 = vsyncadd [#allocation5], 4294966784 }
  0x10   :  { %1522 = dma.done.wait [#allocation8], 9216  }
  0x11   :  { %1523 = vsyncadd [#allocation8], 4294958080 }
  0x12   :  { %1524 = dma.done.wait [#allocation11], 1024  }
  0x13   :  { %1525 = vsyncadd [#allocation11], 4294966272  ;;  %v1594_v0 = vld [vmem:[#allocation4] sm:$0xff]  ;;  %v1596_v1 = vld [vmem:[#allocation4 + $0x8] sm:$0xff]  ;;  %vm96_vm0 = vcmask 7168   ;;  %s1536_s29 = smov [#allocation12]  }
  0x14   :  { %v755_v2 = vunpack.c.l.bf16 %v1594_v0  ;;  %v756_v3 = vunpack.c.h.bf16 %v1594_v0  ;;  %v757_v4 = vunpack.c.l.bf16 %v1596_v1  ;;  %v1329_v5 = vld [vmem:[#allocation7 + $0xb8] sm:$0xff]  ;;  %v1601_v7 = vld [vmem:[#allocation4 + $0x10] sm:$0xff]  ;;  %v758_v10 = vunpack.c.h.bf16 %v1596_v1  ;;  %v1327_v21 = vld [vmem:[#allocation7 + $0xa8] sm:$0xff]  ;;  %s970_s30 = sshll.u32 %s1536_s29, 4  ;;  %s972_s11 = sshll.u32 %s1643_s8, 4  ;;  %s971_s30 = int_to_ptr.vmem [resolvable:$true] %s970_s30  ;;  %s973_s11 = int_to_ptr.hbm [resolvable:$true] %s972_s11 }
  0x15   :  { %v1313_v6 = vld [vmem:[#allocation7 + $0x38] sm:$0xff]  ;;  %674 = vmatpush.bf16.msra.mxu2 %v1329_v5  ;;  %v1328_v12 = vld [vmem:[#allocation7 + $0xb0] sm:$0xff]  ;;  %v759_v16 = vunpack.c.l.bf16 %v1601_v7  ;;  %v760_v19 = vunpack.c.h.bf16 %v1601_v7  ;;  %v1311_v22 = vld [vmem:[#allocation7 + $0x28] sm:$0xff]  ;;  %v242_v47 = vunpack.c.l.b16 %v1596_v1  ;;  %v240_v50 = vunpack.c.l.b16 %v1594_v0 }
  0x16   :  { %v1337_v8 = vld [vmem:[#allocation7 + $0xf8] sm:$0xff]  ;;  %v763_v11 = vadd.f32 %v756_v3, %v755_v2  ;;  %648 = vmatpush.bf16.msra.mxu0 %v1313_v6  ;;  %v1312_v13 = vld [vmem:[#allocation7 + $0x30] sm:$0xff]  ;;  %v1335_v23 = vld [vmem:[#allocation7 + $0xe8] sm:$0xff]  ;;  %v243_v53 = vunpack.c.h.b16 %v1596_v1  ;;  %v241_v58 = vunpack.c.h.b16 %v1594_v0  ;;  %v1534_v0 = vmov 0.0  }
  0x17   :  { %v1321_v9 = vld [vmem:[#allocation7 + $0x78] sm:$0xff]  ;;  %687 = vmatpush.bf16.msra.mxu3 %v1337_v8  ;;  %v1336_v14 = vld [vmem:[#allocation7 + $0xf0] sm:$0xff]  ;;  %v1319_v24 = vld [vmem:[#allocation7 + $0x68] sm:$0xff]  ;;  %v250_v57 = vpack.c.b16 %v242_v47, %v242_v47  ;;  %v248_v60 = vpack.c.b16 %v240_v50, %v240_v50  ;;  %97 = vst.msk [vmem:[#allocation3] sm:$0xff] %vm96_vm0, %v1534_v0 }
  0x18   :  { %661 = vmatpush.bf16.msra.mxu1 %v1321_v9  ;;  %v1320_v15 = vld [vmem:[#allocation7 + $0x70] sm:$0xff]  ;;  %v764_v17 = vadd.f32 %v763_v11, %v757_v4  ;;  %v1605_v18 = vld [vmem:[#allocation4 + $0x18] sm:$0xff]  ;;  %v1326_v29 = vld [vmem:[#allocation7 + $0xa0] sm:$0xff]  ;;  %v251_v62 = vpack.c.b16 %v243_v53, %v243_v53  ;;  %v249_v1 = vpack.c.b16 %v241_v58, %v241_v58 }
  0x19   :  { %675 = vmatpush.bf16.msra.mxu2 %v1328_v12  ;;  %v761_v25 = vunpack.c.l.bf16 %v1605_v18  ;;  %v762_v27 = vunpack.c.h.bf16 %v1605_v18  ;;  %v1310_v30 = vld [vmem:[#allocation7 + $0x20] sm:$0xff]  ;;  %v1325_v35 = vld [vmem:[#allocation7 + $0x98] sm:$0xff]  ;;  %v1324_v39 = vld [vmem:[#allocation7 + $0x90] sm:$0xff] }
  0x1a   :  { %v765_v20 = vadd.f32 %v764_v17, %v758_v10  ;;  %649 = vmatpush.bf16.msra.mxu0 %v1312_v13  ;;  %v1334_v31 = vld [vmem:[#allocation7 + $0xe0] sm:$0xff]  ;;  %v1309_v36 = vld [vmem:[#allocation7 + $0x18] sm:$0xff]  ;;  %v1308_v40 = vld [vmem:[#allocation7 + $0x10] sm:$0xff] }
  0x1b   :  { %688 = vmatpush.bf16.msra.mxu3 %v1336_v14  ;;  %v1318_v32 = vld [vmem:[#allocation7 + $0x60] sm:$0xff]  ;;  %v1333_v37 = vld [vmem:[#allocation7 + $0xd8] sm:$0xff]  ;;  %v1332_v41 = vld [vmem:[#allocation7 + $0xd0] sm:$0xff] }
  0x1c   :  { %662 = vmatpush.bf16.msra.mxu1 %v1320_v15  ;;  %v766_v26 = vadd.f32 %v765_v20, %v759_v16  ;;  %v1317_v38 = vld [vmem:[#allocation7 + $0x58] sm:$0xff]  ;;  %v1316_v42 = vld [vmem:[#allocation7 + $0x50] sm:$0xff]  ;;  %v1323_v43 = vld [vmem:[#allocation7 + $0x88] sm:$0xff] }
  0x1d   :  { %676 = vmatpush.bf16.msra.mxu2 %v1327_v21  ;;  %v1307_v44 = vld [vmem:[#allocation7 + $0x8] sm:$0xff]  ;;  %v1322_v48 = vld [vmem:[#allocation7 + $0x80] sm:$0xff]  ;;  %v1361_v51 = vld [vmem:[#allocation7 + $0x1b8] sm:$0xff] }
  0x1e   :  { %v767_v28 = vadd.f32 %v766_v26, %v760_v19  ;;  %650 = vmatpush.bf16.msra.mxu0 %v1311_v22  ;;  %v1331_v45 = vld [vmem:[#allocation7 + $0xc8] sm:$0xff]  ;;  %v1306_v49 = vld [vmem:[#allocation7] sm:$0xff]  ;;  %v1345_v54 = vld [vmem:[#allocation7 + $0x138] sm:$0xff]  ;;  %v246_v26 = vunpack.c.l.b16 %v1605_v18 }
  0x1f   :  { %689 = vmatpush.bf16.msra.mxu3 %v1335_v23  ;;  %v1315_v46 = vld [vmem:[#allocation7 + $0x48] sm:$0xff]  ;;  %v1330_v52 = vld [vmem:[#allocation7 + $0xc0] sm:$0xff]  ;;  %v1369_v55 = vld [vmem:[#allocation7 + $0x1f8] sm:$0xff] }
  0x20   :  { %663 = vmatpush.bf16.msra.mxu1 %v1319_v24  ;;  %v768_v33 = vadd.f32 %v767_v28, %v761_v25  ;;  %v1314_v56 = vld [vmem:[#allocation7 + $0x40] sm:$0xff]  ;;  %v1353_v59 = vld [vmem:[#allocation7 + $0x178] sm:$0xff]  ;;  %v1360_v61 = vld [vmem:[#allocation7 + $0x1b0] sm:$0xff]  ;;  %v244_v28 = vunpack.c.l.b16 %v1601_v7 }
  0x21   :  { %677 = vmatpush.bf16.msra.mxu2 %v1326_v29  ;;  %v1344_v63 = vld [vmem:[#allocation7 + $0x130] sm:$0xff]  ;;  %v1359_v4 = vld [vmem:[#allocation7 + $0x1a8] sm:$0xff]  ;;  %v1358_v9 = vld [vmem:[#allocation7 + $0x1a0] sm:$0xff]  ;;  %v247_v29 = vunpack.c.h.b16 %v1605_v18  ;;  %v1535_v18 = vmov 0  }
  0x22   :  { %v769_v34 = vadd.f32 %v768_v33, %v762_v27  ;;  %651 = vmatpush.bf16.msra.mxu0 %v1310_v30  ;;  %v1368_v2 = vld [vmem:[#allocation7 + $0x1f0] sm:$0xff]  ;;  %v1343_v5 = vld [vmem:[#allocation7 + $0x128] sm:$0xff]  ;;  %v1342_v10 = vld [vmem:[#allocation7 + $0x120] sm:$0xff]  ;;  %v254_v33 = vpack.c.b16 %v246_v26, %v246_v26  ;;  %1395 = vset.pattern.permute.xlu0 %v1535_v18 }
  0x23   :  { %690 = vmatpush.bf16.msra.mxu3 %v1334_v31  ;;  %v1352_v3 = vld [vmem:[#allocation7 + $0x170] sm:$0xff]  ;;  %v1367_v6 = vld [vmem:[#allocation7 + $0x1e8] sm:$0xff]  ;;  %v1366_v11 = vld [vmem:[#allocation7 + $0x1e0] sm:$0xff] }
  0x24   :  { %664 = vmatpush.bf16.msra.mxu1 %v1318_v32  ;;  %770 = vadd.xlane.f32.xlu0 %v769_v34  ;;  %v1351_v8 = vld [vmem:[#allocation7 + $0x168] sm:$0xff]  ;;  %v1350_v12 = vld [vmem:[#allocation7 + $0x160] sm:$0xff]  ;;  %v1357_v13 = vld [vmem:[#allocation7 + $0x198] sm:$0xff]  ;;  %v245_v32 = vunpack.c.h.b16 %v1601_v7 }
  0x25   :  { %678 = vmatpush.bf16.msra.mxu2 %v1325_v35  ;;  %v1341_v14 = vld [vmem:[#allocation7 + $0x118] sm:$0xff]  ;;  %v1356_v17 = vld [vmem:[#allocation7 + $0x190] sm:$0xff]  ;;  %v1355_v22 = vld [vmem:[#allocation7 + $0x188] sm:$0xff]  ;;  %v252_v35 = vpack.c.b16 %v244_v28, %v244_v28 }
  0x26   :  { %652 = vmatpush.bf16.msra.mxu0 %v1309_v36  ;;  %v1365_v15 = vld [vmem:[#allocation7 + $0x1d8] sm:$0xff]  ;;  %v1340_v19 = vld [vmem:[#allocation7 + $0x110] sm:$0xff]  ;;  %v1339_v23 = vld [vmem:[#allocation7 + $0x108] sm:$0xff]  ;;  %v255_v36 = vpack.c.b16 %v247_v29, %v247_v29 }
  0x27   :  { %691 = vmatpush.bf16.msra.mxu3 %v1333_v37  ;;  %v1349_v16 = vld [vmem:[#allocation7 + $0x158] sm:$0xff]  ;;  %v1364_v20 = vld [vmem:[#allocation7 + $0x1d0] sm:$0xff]  ;;  %v1363_v24 = vld [vmem:[#allocation7 + $0x1c8] sm:$0xff]  ;;  %v253_v37 = vpack.c.b16 %v245_v32, %v245_v32 }
  0x28   :  { %665 = vmatpush.bf16.msra.mxu1 %v1317_v38  ;;  %v1348_v21 = vld [vmem:[#allocation7 + $0x150] sm:$0xff]  ;;  %v1347_v25 = vld [vmem:[#allocation7 + $0x148] sm:$0xff]  ;;  %v1354_v27 = vld [vmem:[#allocation7 + $0x180] sm:$0xff] }
  0x29   :  { %679 = vmatpush.bf16.msra.mxu2 %v1324_v39  ;;  %v1338_v30 = vld [vmem:[#allocation7 + $0x100] sm:$0xff]  ;;  %v754_v38 = vld [vmem:[#allocation3] sm:$0xff]  ;;  %v1375_v50 = vld [vmem:[#allocation9 + $0x28] sm:$0xff] }
  0x2a   :  { %653 = vmatpush.bf16.msra.mxu0 %v1308_v40  ;;  %v1362_v31 = vld [vmem:[#allocation7 + $0x1c0] sm:$0xff]  ;;  %v1372_v58 = vld [vmem:[#allocation9 + $0x10] sm:$0xff]  ;;  %v1371_v0 = vld [vmem:[#allocation9 + $0x8] sm:$0xff] }
  0x2b   :  { %692 = vmatpush.bf16.msra.mxu3 %v1332_v41  ;;  %v1346_v34 = vld [vmem:[#allocation7 + $0x140] sm:$0xff]  ;;  %v1379_v26 = vld [vmem:[#allocation10 + $0x8] sm:$0xff]  ;;  %v1398_v28 = vld [vmem:[%s1640_s5] ss:$0 sm:$0xff] }
  0x2c   :  { %666 = vmatpush.bf16.msra.mxu1 %v1316_v42  ;;  %v1377_v42 = vld [vmem:[#allocation9 + $0x38] sm:$0xff]  ;;  %v1374_v53 = vld [vmem:[#allocation9 + $0x20] sm:$0xff] }
  0x2d   :  { %680 = vmatpush.bf16.msra.mxu2 %v1323_v43 }
  0x2e   :  { %654 = vmatpush.bf16.msra.mxu0 %v1307_v44  ;;  %v1376_v44 = vld [vmem:[#allocation9 + $0x30] sm:$0xff] }
  0x2f   :  { %693 = vmatpush.bf16.msra.mxu3 %v1331_v45 }
  0x30   :  { %667 = vmatpush.bf16.msra.mxu1 %v1315_v46 }
  0x31   :  { %681 = vmatpush.bf16.msra.mxu2 %v1322_v48 }
  0x32   :  { %655 = vmatpush.bf16.msra.mxu0 %v1306_v49 }
  0x33   :  { %694 = vmatpush.bf16.msra.mxu3 %v1330_v52 }
  0x34   :  { %668 = vmatpush.bf16.msra.mxu1 %v1314_v56  ;;  %682 = vmatmul.bf16.vlgmr.msra.gmra.mxu2 %v250_v57  ;;  %v1373_v56 = vld [vmem:[#allocation9 + $0x18] sm:$0xff] }
  0x35   :  { %726 = vmatpush.bf16.msrb.mxu2 %v1361_v51  ;;  %656 = vmatmul.bf16.vlgmr.msra.gmra.mxu0 %v248_v60 }
  0x36   :  { %700 = vmatpush.bf16.msrb.mxu0 %v1345_v54  ;;  %695 = vmatmul.bf16.vlgmr.msra.gmra.mxu3 %v251_v62 }
  0x37   :  { %739 = vmatpush.bf16.msrb.mxu3 %v1369_v55  ;;  %669 = vmatmul.bf16.vlgmr.msra.gmra.mxu1 %v249_v1 }
  0x38   :  { %713 = vmatpush.bf16.msrb.mxu1 %v1353_v59 }
  0x39   :  { %727 = vmatpush.bf16.msrb.mxu2 %v1360_v61 }
  0x3a   :  { %701 = vmatpush.bf16.msrb.mxu0 %v1344_v63 }
  0x3b   :  { %740 = vmatpush.bf16.msrb.mxu3 %v1368_v2 }
  0x3c   :  { %714 = vmatpush.bf16.msrb.mxu1 %v1352_v3 }
  0x3d   :  { %728 = vmatpush.bf16.msrb.mxu2 %v1359_v4  ;;  %v1370_v4 = vld [vmem:[#allocation9] sm:$0xff] }
  0x3e   :  { %702 = vmatpush.bf16.msrb.mxu0 %v1343_v5  ;;  %v1385_v5 = vld [vmem:[#allocation10 + $0x38] sm:$0xff] }
  0x3f   :  { %741 = vmatpush.bf16.msrb.mxu3 %v1367_v6  ;;  %v1384_v6 = vld [vmem:[#allocation10 + $0x30] sm:$0xff] }
  0x40   :  { %715 = vmatpush.bf16.msrb.mxu1 %v1351_v8 }
  0x41   :  { %729 = vmatpush.bf16.msrb.mxu2 %v1358_v9  ;;  %v1383_v9 = vld [vmem:[#allocation10 + $0x28] sm:$0xff] }
  0x42   :  { %703 = vmatpush.bf16.msrb.mxu0 %v1342_v10 }
  0x43   :  { %742 = vmatpush.bf16.msrb.mxu3 %v1366_v11  ;;  %v1382_v11 = vld [vmem:[#allocation10 + $0x20] sm:$0xff] }
  0x44   :  { %716 = vmatpush.bf16.msrb.mxu1 %v1350_v12 }
  0x45   :  { %730 = vmatpush.bf16.msrb.mxu2 %v1357_v13  ;;  %v1381_v13 = vld [vmem:[#allocation10 + $0x18] sm:$0xff] }
  0x46   :  { %704 = vmatpush.bf16.msrb.mxu0 %v1341_v14 }
  0x47   :  { %743 = vmatpush.bf16.msrb.mxu3 %v1365_v15  ;;  %v1396_v15 = vld [vmem:[%s1637_s2] ss:$0 sm:$0xff] }
  0x48   :  { %717 = vmatpush.bf16.msrb.mxu1 %v1349_v16  ;;  %v1380_v16 = vld [vmem:[#allocation10 + $0x10] sm:$0xff] }
  0x49   :  { %731 = vmatpush.bf16.msrb.mxu2 %v1356_v17 }
  0x4a   :  { %705 = vmatpush.bf16.msrb.mxu0 %v1340_v19 }
  0x4b   :  { %744 = vmatpush.bf16.msrb.mxu3 %v1364_v20  ;;  %v1397_v20 = vld [vmem:[%s1638_s3] ss:$0 sm:$0xff] }
  0x4c   :  { %718 = vmatpush.bf16.msrb.mxu1 %v1348_v21 }
  0x4d   :  { %732 = vmatpush.bf16.msrb.mxu2 %v1355_v22 }
  0x4e   :  { %706 = vmatpush.bf16.msrb.mxu0 %v1339_v23 }
  0x4f   :  { %745 = vmatpush.bf16.msrb.mxu3 %v1363_v24 }
  0x50   :  { %719 = vmatpush.bf16.msrb.mxu1 %v1347_v25 }
  0x51   :  { %733 = vmatpush.bf16.msrb.mxu2 %v1354_v27  ;;  %v1378_v27 = vld [vmem:[#allocation10] sm:$0xff] }
  0x52   :  { %707 = vmatpush.bf16.msrb.mxu0 %v1338_v30 }
  0x53   :  { %746 = vmatpush.bf16.msrb.mxu3 %v1362_v31 }
  0x54   :  { %734 = vmatmul.bf16.vlgmr.msrb.gmra.mxu2 %v254_v33  ;;  %720 = vmatpush.bf16.msrb.mxu1 %v1346_v34  ;;  %v1399_v34 = vld [vmem:[%s1642_s7] ss:$0 sm:$0xff] }
  0x55   :  { %708 = vmatmul.bf16.vlgmr.msrb.gmra.mxu0 %v252_v35 }
  0x56   :  { %747 = vmatmul.bf16.vlgmr.msrb.gmra.mxu3 %v255_v36  ;;  %868 = vmatpush.bf16.msra.mxu0 %v1377_v42 }
  0x57   :  { %721 = vmatmul.bf16.vlgmr.msrb.gmra.mxu1 %v253_v37 }
  0x58   :  { %951 = vmatpush.bf16.msra.mxu1 %v1385_v5 }
  0x5a   :  { %869 = vmatpush.bf16.msra.mxu0 %v1376_v44 }
  0x5c   :  { %952 = vmatpush.bf16.msra.mxu1 %v1384_v6 }
  0x5e   :  { %870 = vmatpush.bf16.msra.mxu0 %v1375_v50 }
  0x60   :  { %953 = vmatpush.bf16.msra.mxu1 %v1383_v9 }
  0x62   :  { %871 = vmatpush.bf16.msra.mxu0 %v1374_v53 }
  0x64   :  { %954 = vmatpush.bf16.msra.mxu1 %v1382_v11 }
  0x66   :  { %872 = vmatpush.bf16.msra.mxu0 %v1373_v56 }
  0x68   :  { %955 = vmatpush.bf16.msra.mxu1 %v1381_v13 }
  0x6a   :  { %873 = vmatpush.bf16.msra.mxu0 %v1372_v58 }
  0x6c   :  { %956 = vmatpush.bf16.msra.mxu1 %v1380_v16 }
  0x6e   :  { %874 = vmatpush.bf16.msra.mxu0 %v1371_v0 }
  0x70   :  { %957 = vmatpush.bf16.msra.mxu1 %v1379_v26 }
  0x72   :  { %875 = vmatpush.bf16.msra.mxu0 %v1370_v4 }
  0x74   :  { %958 = vmatpush.bf16.msra.mxu1 %v1378_v27 }
  0x97   :  { %v771_v39 = vpop.xlane.xlu0 %770 }
  0x98   :  { %v772_v40 = vadd.f32 %v771_v39, %v754_v38 }
  0x9a   :  { %774 = vst.msk [vmem:[#allocation3] sm:$0xff] %vm96_vm0, %v772_v40 }
  0xa1   :  { %v780_v7 = vld [vmem:[#allocation3] sm:$0xff] }
  0xa2   :  { %v781_v41 = vmul.f32 -0.000546875, %v780_v7 }
  0xa4   :  { %785 = vperm.xlu0 %1395, %v781_v41  }
  0xb2   :  { %v657_v43 = vpop.f32.mrf.mxu0 }
  0xb4   :  { %v670_v45 = vpop.f32.mrf.mxu1 }
  0xb5   :  { %v671_v46 = vadd.f32 %v670_v45, %v657_v43 }
  0xb7   :  { %v683_v47 = vpop.f32.mrf.mxu2 }
  0xb8   :  { %v684_v48 = vadd.f32 %v683_v47, %v671_v46 }
  0xb9   :  { %v696_v49 = vpop.f32.mrf.mxu3 }
  0xba   :  { %v697_v51 = vadd.f32 %v696_v49, %v684_v48  ;;  %v659_v52 = vpop.f32.mrf.mxu0 }
  0xbc   :  { %v672_v54 = vpop.f32.mrf.mxu1 }
  0xbf   :  { %v685_v55 = vpop.f32.mrf.mxu2 }
  0xc1   :  { %v698_v57 = vpop.f32.mrf.mxu3 }
  0xd2   :  { %v709_v59 = vpop.f32.mrf.mxu0 }
  0xd3   :  { %v710_v8 = vadd.f32 %v709_v59, %v697_v51 }
  0xd4   :  { %v722_v60 = vpop.f32.mrf.mxu1 }
  0xd5   :  { %v723_v10 = vadd.f32 %v722_v60, %v710_v8 }
  0xd7   :  { %v735_v61 = vpop.f32.mrf.mxu2 }
  0xd8   :  { %v736_v12 = vadd.f32 %v735_v61, %v723_v10 }
  0xd9   :  { %v748_v62 = vpop.f32.mrf.mxu3 }
  0xda   :  { %v711_v63 = vpop.f32.mrf.mxu0  ;;  %v749_v14 = vadd.f32 %v748_v62, %v736_v12 }
  0xdc   :  { %v724_v2 = vpop.f32.mrf.mxu1  ;;  %v779_v19 = vmul.f32 1.96, %v749_v14 }
  0xdf   :  { %v737_v1 = vpop.f32.mrf.mxu2 }
  0xe1   :  { %v750_v3 = vpop.f32.mrf.mxu3 }
 0x116   :  { %v786_v17 = vpop.permute.xlu0 %785 }
 0x117   :  { %v791_v21 = vmul.f32 %v1396_v15, %v786_v17 }
 0x119   :  { %v792_v22 = vadd.f32 %v791_v21, %v779_v19 }
 0x11b   :  { %v797_v23 = vadd.f32 %v1397_v20, %v792_v22 }
 0x11d   :  { %v798_v24 = vmax.f32 %v797_v23, 0.0 }
 0x11f   :  { %v799_v25 = vpack.c.bf16 %v798_v24, %v798_v24 }
 0x121   :  { %876 = vmatmul.bf16.vlgmr.msra.gmra.mxu0 %v799_v25 }
 0x19e   :  { %v877_v29 = vpop.f32.mrf.mxu0 }
 0x19f   :  { %v878_v30 = vadd.f32 %v1398_v28, %v877_v29 }
 0x1a1   :  { %v881_v31 = vmax.f32 %v878_v30, 0.0 }
 0x1a3   :  { %v882_v32 = vpack.c.bf16 %v881_v31, %v881_v31 }
 0x1a5   :  { %959 = vmatmul.bf16.vlgmr.msra.gmra.mxu1 %v882_v32 }
 0x1a6   :  { %v879_v33 = vpop.f32.mrf.mxu0 }
 0x222   :  { %v960_v35 = vpop.f32.mrf.mxu1 }
 0x223   :  { %v961_v36 = vadd.f32 %v1399_v34, %v960_v35 }
 0x225   :  { %964 = vst [vmem:[#allocation12] sm:$0xff] %v961_v36 }
 0x226   :  { %975 = dma.vmem_to_hbm [thread:$0]  %s971_s30, 128, %s973_s11, [#allocation6]  }
 0x22a   :  { %v962_v37 = vpop.f32.mrf.mxu1 }
 0x22b   :  { %1526 = dma.done.wait [#allocation6], 128  }
 0x22c   :  { %1527 = vsyncadd [#allocation6], 4294967168 }
 0x22d   :  { %980 = vsyncpa [#allocation5], 1 }
 0x22e   :  { %981 = vsyncpa [#allocation8], 1 }
 0x22f   :  { %982 = vsyncpa [#allocation11], 1 }
 0x230   :  { %983 = vsyncpa [#allocation6], 1 }

</bundles_post_ra>
